<compile_context>
chip_gen: v7x
topology: tpu7x:2x2x1
jax: 0.10.0
libtpu: 0.0.40
codegen_flags: <defaults>
</compile_context>

<pallas_src>
import functools

import jax
import jax.numpy as jnp
from jax.experimental import pallas as pl
from jax.experimental.pallas import tpu as pltpu


def _two_stream_kernel(clip_ref, w1_ref, b1_ref, w2_ref, b2_ref, out_ref, acc_ref,
                       *, num_frames, batch_tile):
    """Fused two-stream forward.

    Per grid step: one bf16 MXU matmul (batch_tile*T, tile_d) @ (tile_d, 2*Hid)
    accumulated in f32.  Columns [:Hid] are the RGB-stream pre-activations,
    columns [Hid:] the motion-stream ones (rgbdiff is linear, so the frame
    difference is applied in embedding space).  On the last D tile: temporal
    diff (motion half only), bias + ReLU, temporal mean, fused 0.5-scaled head
    matmul, lane-dense (128-padded) output store.
    """
    d = pl.program_id(1)
    nd = pl.num_programs(1)
    tile_d = clip_ref.shape[-1]
    two_h = acc_ref.shape[-1]
    hid = two_h // 2
    t = num_frames

    @pl.when(d == 0)
    def _init():
        acc_ref[...] = jnp.zeros_like(acc_ref)

    # Both streams in a single MXU matmul; bf16 inputs, f32 accumulation.
    d_off = pl.multiple_of(d * tile_d, tile_d)
    acc_ref[...] += jnp.dot(clip_ref[...], w1_ref[pl.ds(d_off, tile_d), :],
                            preferred_element_type=jnp.float32)

    @pl.when(d == nd - 1)
    def _finalize():
        # 0.0 for RGB columns, 1.0 for motion (frame-difference) columns.
        is_mot = (jax.lax.broadcasted_iota(jnp.int32, (1, two_h), 1) >= hid
                  ).astype(jnp.float32)
        b1 = b1_ref[...]
        w2 = w2_ref[...]
        b2 = b2_ref[...]
        inv_tm = 1.0 / (t - 1)
        for j in range(batch_tile):                      # static unroll; small
            hi = acc_ref[pl.ds(j * t + 1, t - 1), :]     # frames 1..T-1   (Tm, 2H)
            lo = acc_ref[pl.ds(j * t, t - 1), :]         # frames 0..T-2   (Tm, 2H)
            v = hi - lo * is_mot                         # RGB: hi, motion: diff
            emb = jnp.maximum(v + b1, 0.0)               # bias + ReLU (f32)
            pooled = jnp.sum(emb, axis=0, keepdims=True) * inv_tm   # (1, 2H)
            out_ref[pl.ds(j, 1), :] = (
                jnp.dot(pooled, w2, preferred_element_type=jnp.float32) + b2)


def _pick_tile_d(d_total):
    for cand in (512, 384, 256, 128):
        if d_total % cand == 0:
            return cand
    return d_total  # full width (allowed as "equals the full array dim")


def _pick_tile_b(batch, num_frames, max_rows=512):
    # tile_b must divide B and satisfy the (8,128) output-block rule.
    valid = [c for c in range(1, batch + 1)
             if batch % c == 0 and (c == batch or c % 8 == 0)]
    fitting = [c for c in valid if c * num_frames <= max_rows]
    return max(fitting) if fitting else min(valid)


def two_stream_forward(clip, params, flow_clip=None):
    """TwoStreamNetwork.forward: 0.5*model(clip[:,1:]) + 0.5*motion_model(rgbdiff)."""
    if flow_clip is not None:
        # TODO(synk): a separate optical-flow clip is not fused into the
        # single-read kernel; fall back to the pure-JAX math for that path.
        return two_stream_reference(clip, params, flow_clip)

    B, T, C, H, W = clip.shape
    D = C * H * W
    w1r, b1r, w2r, b2r, w1m, b1m, w2m, b2m = params
    hid = w1r.shape[1]
    n_cls = w2r.shape[1]
    n_pad = ((n_cls + 127) // 128) * 128          # lane-dense output width

    # Fused parameters: one embed matmul (D, 2*Hid) and one 0.5-scaled head.
    w1_cat = jnp.concatenate([w1r, w1m], axis=1).astype(jnp.bfloat16)        # (D, 2H)
    b1_cat = jnp.concatenate([b1r, b1m], axis=1).astype(jnp.float32)         # (1, 2H)
    w2_cat = 0.5 * jnp.concatenate([w2r, w2m], axis=0).astype(jnp.float32)   # (2H, C)
    w2_cat = jnp.pad(w2_cat, ((0, 0), (0, n_pad - n_cls)))
    b2_cat = 0.5 * (b2r + b2m).astype(jnp.float32)
    b2_cat = jnp.pad(b2_cat, ((0, 0), (0, n_pad - n_cls)))

    # Single bf16 HBM read of the clip; slicing + rgbdiff happen in-kernel.
    x = clip.reshape(B * T, D).astype(jnp.bfloat16)

    tile_d = _pick_tile_d(D)
    tile_b = _pick_tile_b(B, T)
    grid = (B // tile_b, D // tile_d)
    rows = tile_b * T

    kernel = functools.partial(_two_stream_kernel, num_frames=T, batch_tile=tile_b)

    out = pl.pallas_call(
        kernel,
        out_shape=jax.ShapeDtypeStruct((B, n_pad), jnp.float32),
        grid_spec=pltpu.PrefetchScalarGridSpec(
            num_scalar_prefetch=0,
            grid=grid,
            in_specs=[
                pl.BlockSpec((rows, tile_d), lambda i, d: (i, d)),   # clip rows: streamed
                pl.BlockSpec((D, 2 * hid), lambda i, d: (0, 0)),     # w1: VMEM-resident
                pl.BlockSpec((1, 2 * hid), lambda i, d: (0, 0)),     # b1
                pl.BlockSpec((2 * hid, n_pad), lambda i, d: (0, 0)), # fused head
                pl.BlockSpec((1, n_pad), lambda i, d: (0, 0)),       # fused head bias
            ],
            out_specs=pl.BlockSpec((tile_b, n_pad), lambda i, d: (i, 0)),
            scratch_shapes=[pltpu.VMEM((rows, 2 * hid), jnp.float32)],
        ),
        compiler_params=pltpu.CompilerParams(
            dimension_semantics=("parallel", "arbitrary"),
            vmem_limit_bytes=32 * 1024 * 1024,
        ),
    )(x, w1_cat, b1_cat, w2_cat, b2_cat)

    return out[:, :n_cls]


def two_stream_reference(clip, params, flow_clip=None):
    """Pure-f32 reference for the module's forward-pass semantics."""
    B, T, C, H, W = clip.shape
    D = C * H * W
    motion_src = flow_clip if flow_clip is not None else clip
    x_rgb = clip[:, 1:].reshape(B, T - 1, D)
    x_mot = (motion_src[:, 1:] - motion_src[:, :-1]).reshape(B, T - 1, D)
    w1r, b1r, w2r, b2r, w1m, b1m, w2m, b2m = params
    hp = jax.lax.Precision.HIGHEST

    def stream(xx, w1, b1, w2, b2):
        emb = jnp.maximum(jnp.einsum("btd,dh->bth", xx, w1, precision=hp) + b1, 0.0)
        pooled = emb.mean(axis=1)
        return jnp.dot(pooled, w2, precision=hp) + b2

    return (0.5 * stream(x_rgb, w1r, b1r, w2r, b2r)
            + 0.5 * stream(x_mot, w1m, b1m, w2m, b2m))


def two_stream_reference_bf16_inputs(clip, params, flow_clip=None):
    """Reference with the same bf16 clip / embed-weight quantization the kernel uses."""
    q = lambda a: a.astype(jnp.bfloat16).astype(jnp.float32)
    w1r, b1r, w2r, b2r, w1m, b1m, w2m, b2m = params
    params_q = (q(w1r), b1r, w2r, b2r, q(w1m), b1m, w2m, b2m)
    flow_q = None if flow_clip is None else q(flow_clip)
    return two_stream_reference(q(clip), params_q, flow_q)


def init_params(key, d_in, hidden, num_classes):
    """Deterministic synthetic parameters for the RGB model and its deep copy."""
    ks = jax.random.split(key, 8)
    scale = 0.02
    w1r = scale * jax.random.normal(ks[0], (d_in, hidden), jnp.float32)
    b1r = scale * jax.random.normal(ks[1], (1, hidden), jnp.float32)
    w2r = scale * jax.random.normal(ks[2], (hidden, num_classes), jnp.float32)
    b2r = scale * jax.random.normal(ks[3], (1, num_classes), jnp.float32)
    w1m = scale * jax.random.normal(ks[4], (d_in, hidden), jnp.float32)
    b1m = scale * jax.random.normal(ks[5], (1, hidden), jnp.float32)
    w2m = scale * jax.random.normal(ks[6], (hidden, num_classes), jnp.float32)
    b2m = scale * jax.random.normal(ks[7], (1, num_classes), jnp.float32)
    return (w1r, b1r, w2r, b2r, w1m, b1m, w2m, b2m)


if __name__ == "__main__":
    # Small shapes: batch=2, seq=8 frames, channels=4, spatial=16x16, hidden=32, 16 classes.
    B, T, C, H, W = 2, 8, 4, 16, 16
    hidden, num_classes = 32, 16
    d_in = C * H * W

    key = jax.random.PRNGKey(0)
    k_clip, k_params = jax.random.split(key)
    clip = jax.random.normal(k_clip, (B, T, C, H, W), jnp.float32)
    params = init_params(k_params, d_in, hidden, num_classes)

    out = two_stream_forward(clip, params)
    out = jax.block_until_ready(out)

    ref_q = two_stream_reference_bf16_inputs(clip, params)   # same bf16 quantization
    ref_f32 = two_stream_reference(clip, params)              # pure module semantics

    assert out.shape == (B, num_classes)
    assert jnp.allclose(out, ref_q, atol=2e-3, rtol=2e-2), "mismatch vs bf16-input reference"
    assert jnp.allclose(out, ref_f32, atol=3e-2, rtol=5e-2), "mismatch vs f32 reference"
    print("KERNEL_OK")
</pallas_src>

<mosaic_0001>
module attributes {stable_mosaic.version = 11 : i64} {
  func.func @_two_stream_kernel(%arg0: i32, %arg1: i32, %arg2: memref<16x512xbf16, #tpu.memory_space<vmem>>, %arg3: memref<1024x64xbf16, #tpu.memory_space<vmem>>, %arg4: memref<1x64xf32, #tpu.memory_space<vmem>>, %arg5: memref<64x128xf32, #tpu.memory_space<vmem>>, %arg6: memref<1x128xf32, #tpu.memory_space<vmem>>, %arg7: memref<2x128xf32, #tpu.memory_space<vmem>>, %arg8: memref<16x64xf32, #tpu.memory_space<vmem>>) attributes {dimension_semantics = [#tpu.dimension_semantics<parallel>, #tpu.dimension_semantics<arbitrary>], iteration_bounds = array<i64: 1, 2>, scalar_prefetch = 0 : i64, scratch_operands = 1 : i64, tpu.core_type = #tpu.core_type<tc>, window_params = [{transform_indices = @transform_0, window_bounds = array<i64: 16, 512>}, {pipeline_mode = #tpu.pipeline_mode<synchronous>, transform_indices = @transform_1, window_bounds = array<i64: 1024, 64>}, {pipeline_mode = #tpu.pipeline_mode<synchronous>, transform_indices = @transform_2, window_bounds = array<i64: 1, 64>}, {pipeline_mode = #tpu.pipeline_mode<synchronous>, transform_indices = @transform_3, window_bounds = array<i64: 64, 128>}, {pipeline_mode = #tpu.pipeline_mode<synchronous>, transform_indices = @transform_4, window_bounds = array<i64: 1, 128>}, {transform_indices = @transform_5, window_bounds = array<i64: 2, 128>}]} {
    %c0_i32 = arith.constant 0 : i32
    %0 = arith.cmpi eq, %arg1, %c0_i32 : i32
    %1 = arith.extui %0 : i1 to i32
    %c0_i32_0 = arith.constant 0 : i32
    %2 = arith.cmpi ne, %1, %c0_i32_0 : i32
    scf.if %2 {
      %cst_8 = arith.constant 0.000000e+00 : f32
      %15 = vector.broadcast %cst_8 : f32 to vector<16x64xf32>
      %c0_9 = arith.constant 0 : index
      %c0_10 = arith.constant 0 : index
      %16 = vector.load %arg8[%c0_9, %c0_10] : memref<16x64xf32, #tpu.memory_space<vmem>>, vector<16x64xf32>
      tpu.vector_store %arg8[%c0_9, %c0_10], %15 {strides = array<i32>} : memref<16x64xf32, #tpu.memory_space<vmem>>, vector<16x64xf32>,
    } else {
    }
    %c512_i32 = arith.constant 512 : i32
    %3 = arith.muli %arg1, %c512_i32 : i32
    %4 = tpu.assume_multiple %3, 512 : i32
    %c0 = arith.constant 0 : index
    %c0_1 = arith.constant 0 : index
    %5 = vector.load %arg8[%c0, %c0_1] : memref<16x64xf32, #tpu.memory_space<vmem>>, vector<16x64xf32>
    %c0_2 = arith.constant 0 : index
    %c0_3 = arith.constant 0 : index
    %6 = vector.load %arg2[%c0_2, %c0_3] : memref<16x512xbf16, #tpu.memory_space<vmem>>, vector<16x512xbf16>
    %7 = arith.index_cast %4 : i32 to index
    %c0_4 = arith.constant 0 : index
    %8 = vector.load %arg3[%7, %c0_4] : memref<1024x64xbf16, #tpu.memory_space<vmem>>, vector<512x64xbf16>
    %cst = arith.constant dense<0.000000e+00> : vector<16x64xf32>
    %9 = tpu.matmul %6, %8, %cst {dimension_numbers = #tpu.dot_dimension_numbers<[1], [0], [0], [1], [0, 0, 1, 1], [], []>} : vector<16x512xbf16>, vector<512x64xbf16>, vector<16x64xf32> -> vector<16x64xf32>
    %10 = arith.addf %5, %9 : vector<16x64xf32>
    %c0_5 = arith.constant 0 : index
    %c0_6 = arith.constant 0 : index
    %11 = vector.load %arg8[%c0_5, %c0_6] : memref<16x64xf32, #tpu.memory_space<vmem>>, vector<16x64xf32>
    tpu.vector_store %arg8[%c0_5, %c0_6], %10 {strides = array<i32>} : memref<16x64xf32, #tpu.memory_space<vmem>>, vector<16x64xf32>,
    %c1_i32 = arith.constant 1 : i32
    %12 = arith.cmpi eq, %arg1, %c1_i32 : i32
    %13 = arith.extui %12 : i1 to i32
    %c0_i32_7 = arith.constant 0 : i32
    %14 = arith.cmpi ne, %13, %c0_i32_7 : i32
    scf.if %14 {
      %15 = tpu.iota {dimensions = array<i32: 1>} : vector<1x64xi32>
      %c32_i32 = arith.constant 32 : i32
      %16 = vector.broadcast %c32_i32 : i32 to vector<1x64xi32>
      %17 = arith.cmpi sge, %15, %16 : vector<1x64xi32>
      %18 = arith.extui %17 : vector<1x64xi1> to vector<1x64xi32>
      %19 = arith.sitofp %18 : vector<1x64xi32> to vector<1x64xf32>
      %c0_8 = arith.constant 0 : index
      %c0_9 = arith.constant 0 : index
      %20 = vector.load %arg4[%c0_8, %c0_9] : memref<1x64xf32, #tpu.memory_space<vmem>>, vector<1x64xf32>
      %c0_10 = arith.constant 0 : index
      %c0_11 = arith.constant 0 : index
      %21 = vector.load %arg5[%c0_10, %c0_11] : memref<64x128xf32, #tpu.memory_space<vmem>>, vector<64x128xf32>
      %c0_12 = arith.constant 0 : index
      %c0_13 = arith.constant 0 : index
      %22 = vector.load %arg6[%c0_12, %c0_13] : memref<1x128xf32, #tpu.memory_space<vmem>>, vector<1x128xf32>
      %c1 = arith.constant 1 : index
      %c0_14 = arith.constant 0 : index
      %23 = vector.load %arg8[%c1, %c0_14] : memref<16x64xf32, #tpu.memory_space<vmem>>, vector<7x64xf32>
      %c0_15 = arith.constant 0 : index
      %c0_16 = arith.constant 0 : index
      %24 = vector.load %arg8[%c0_15, %c0_16] : memref<16x64xf32, #tpu.memory_space<vmem>>, vector<7x64xf32>
      %25 = vector.broadcast %19 : vector<1x64xf32> to vector<7x64xf32>
      %26 = arith.mulf %24, %25 : vector<7x64xf32>
      %27 = arith.subf %23, %26 : vector<7x64xf32>
      %28 = vector.broadcast %20 : vector<1x64xf32> to vector<7x64xf32>
      %29 = arith.addf %27, %28 : vector<7x64xf32>
      %cst_17 = arith.constant 0.000000e+00 : f32
      %30 = vector.broadcast %cst_17 : f32 to vector<7x64xf32>
      %31 = arith.maximumf %29, %30 : vector<7x64xf32>
      %cst_18 = arith.constant dense<0.000000e+00> : vector<64xf32>
      %32 = vector.multi_reduction <add>, %31, %cst_18 [0] : vector<7x64xf32> to vector<64xf32>
      %33 = vector.shape_cast %32 : vector<64xf32> to vector<1x64xf32>
      %cst_19 = arith.constant 0.142857149 : f32
      %34 = vector.broadcast %cst_19 : f32 to vector<1x64xf32>
      %35 = arith.mulf %33, %34 : vector<1x64xf32>
      %cst_20 = arith.constant dense<0.000000e+00> : vector<1x128xf32>
      %36 = tpu.matmul %35, %21, %cst_20 {dimension_numbers = #tpu.dot_dimension_numbers<[1], [0], [0], [1], [0, 0, 1, 1], [], []>} : vector<1x64xf32>, vector<64x128xf32>, vector<1x128xf32> -> vector<1x128xf32>
      %37 = arith.addf %36, %22 : vector<1x128xf32>
      %c0_21 = arith.constant 0 : index
      %c0_22 = arith.constant 0 : index
      %38 = vector.load %arg7[%c0_21, %c0_22] : memref<2x128xf32, #tpu.memory_space<vmem>>, vector<1x128xf32>
      tpu.vector_store %arg7[%c0_21, %c0_22], %37 {strides = array<i32>} : memref<2x128xf32, #tpu.memory_space<vmem>>, vector<1x128xf32>,
      %c9 = arith.constant 9 : index
      %c0_23 = arith.constant 0 : index
      %39 = vector.load %arg8[%c9, %c0_23] : memref<16x64xf32, #tpu.memory_space<vmem>>, vector<7x64xf32>
      %c8 = arith.constant 8 : index
      %c0_24 = arith.constant 0 : index
      %40 = vector.load %arg8[%c8, %c0_24] : memref<16x64xf32, #tpu.memory_space<vmem>>, vector<7x64xf32>
      %41 = vector.broadcast %19 : vector<1x64xf32> to vector<7x64xf32>
      %42 = arith.mulf %40, %41 : vector<7x64xf32>
      %43 = arith.subf %39, %42 : vector<7x64xf32>
      %44 = vector.broadcast %20 : vector<1x64xf32> to vector<7x64xf32>
      %45 = arith.addf %43, %44 : vector<7x64xf32>
      %cst_25 = arith.constant 0.000000e+00 : f32
      %46 = vector.broadcast %cst_25 : f32 to vector<7x64xf32>
      %47 = arith.maximumf %45, %46 : vector<7x64xf32>
      %cst_26 = arith.constant dense<0.000000e+00> : vector<64xf32>
      %48 = vector.multi_reduction <add>, %47, %cst_26 [0] : vector<7x64xf32> to vector<64xf32>
      %49 = vector.shape_cast %48 : vector<64xf32> to vector<1x64xf32>
      %cst_27 = arith.constant 0.142857149 : f32
      %50 = vector.broadcast %cst_27 : f32 to vector<1x64xf32>
      %51 = arith.mulf %49, %50 : vector<1x64xf32>
      %cst_28 = arith.constant dense<0.000000e+00> : vector<1x128xf32>
      %52 = tpu.matmul %51, %21, %cst_28 {dimension_numbers = #tpu.dot_dimension_numbers<[1], [0], [0], [1], [0, 0, 1, 1], [], []>} : vector<1x64xf32>, vector<64x128xf32>, vector<1x128xf32> -> vector<1x128xf32>
      %53 = arith.addf %52, %22 : vector<1x128xf32>
      %c1_29 = arith.constant 1 : index
      %c0_30 = arith.constant 0 : index
      %54 = vector.load %arg7[%c1_29, %c0_30] : memref<2x128xf32, #tpu.memory_space<vmem>>, vector<1x128xf32>
      tpu.vector_store %arg7[%c1_29, %c0_30], %53 {strides = array<i32>} : memref<2x128xf32, #tpu.memory_space<vmem>>, vector<1x128xf32>,
    } else {
    }
    return
  }
  func.func @transform_0(%arg0: i32, %arg1: i32) -> (i32, i32) {
    %c0_i32 = arith.constant 0 : i32
    return %arg0, %arg1 : i32, i32
  }
  func.func @transform_1(%arg0: i32, %arg1: i32) -> (i32, i32) {
    %c0_i32 = arith.constant 0 : i32
    %c0_i32_0 = arith.constant 0 : i32
    %c0_i32_1 = arith.constant 0 : i32
    return %c0_i32, %c0_i32_0 : i32, i32
  }
  func.func @transform_2(%arg0: i32, %arg1: i32) -> (i32, i32) {
    %c0_i32 = arith.constant 0 : i32
    %c0_i32_0 = arith.constant 0 : i32
    %c0_i32_1 = arith.constant 0 : i32
    return %c0_i32, %c0_i32_0 : i32, i32
  }
  func.func @transform_3(%arg0: i32, %arg1: i32) -> (i32, i32) {
    %c0_i32 = arith.constant 0 : i32
    %c0_i32_0 = arith.constant 0 : i32
    %c0_i32_1 = arith.constant 0 : i32
    return %c0_i32, %c0_i32_0 : i32, i32
  }
  func.func @transform_4(%arg0: i32, %arg1: i32) -> (i32, i32) {
    %c0_i32 = arith.constant 0 : i32
    %c0_i32_0 = arith.constant 0 : i32
    %c0_i32_1 = arith.constant 0 : i32
    return %c0_i32, %c0_i32_0 : i32, i32
  }
  func.func @transform_5(%arg0: i32, %arg1: i32) -> (i32, i32) {
    %c0_i32 = arith.constant 0 : i32
    %c0_i32_0 = arith.constant 0 : i32
    return %arg0, %c0_i32 : i32, i32
  }
}

</mosaic_0001>

<bundles_post_ra>
// kernel: tpu_custom_call.1
= control target key start
LH: loop header
LB: loop body
LE: loop exit
PB: predicated region body
PF: predicated region fallthrough
CT: control target
= control target key end

     0   :  { %10 = vsyncpa [#allocation5], 0  ;;  %s1290_s18 = smov 0   ;;  %s1292_s19 = smov 0   ;;  %s1460_s0 = inlined_call_operand.vmem [shape: bf16[16,1024], index: 0, kind: input, shape index: {}]   ;;  %s1461_s1 = inlined_call_operand.vmem [shape: bf16[1024,64], index: 1, kind: input, shape index: {}]   ;;  %s1462_s2 = inlined_call_operand.vmem [shape: f32[1,64], index: 2, kind: input, shape index: {}]   ;;  %s1463_s3 = inlined_call_operand.vmem [shape: f32[64,128], index: 3, kind: input, shape index: {}]   ;;  %s1464_s4 = inlined_call_operand.vmem [shape: f32[1,128], index: 4, kind: input, shape index: {}]   ;;  %s1465_s5 = inlined_call_operand.hbm [shape: f32[2,128], index: 5, kind: output, shape index: {}]  }
   0x1   :  { %s1294_s20 = smov 0   ;;  %s1296_s21 = smov 0  }
   0x2   :  { %s1298_s22 = smov 0  }
   0x3 LB: > { %s915_s23 = sadd.s32 4294967295, %s1253_s22   ;;  %s25_s24 = sadd.s32 1, %s1249_s21  ;;  %s1253_s22 = sphi %s1298_s22, %s16_s22   ;;  %s1249_s21 = sphi %s1296_s21, %s1470_s21   ;;  %s1245_s20 = sphi %s1294_s20, %s1469_s20   ;;  %s1241_s19 = sphi %s1292_s19, %s1468_s19   ;;  %s1237_s18 = sphi %s1290_s18, %s1467_s18  }
   0x4   : > { %p26_p0 = scmp.ge.s32.totalorder %s25_s24, 2  ;;  %p44_p1 = scmp.ne.s32.totalorder %s1241_s19, %s1237_s18 }
   0x5   : > { %p45_p2 = scmp.eq.s32.totalorder %s1253_s22, 0  ;;  %s37_s26 = sadd.s32 1, %s1241_s19 }
   0x6   : > { %s1472_s24 = smov (%p26_p0, %s25_s24), 0  ;;  %p917_p5 = scmp.ge.s32.totalorder %s1253_s22, 2 }
   0x7   : > { %p46_p3 = por %p45_p2, %p44_p1  ;;  %s33_s25 = ssub.s32 %s1249_s21, %s1472_s24 }
   0x8   : > { %p35_p4 = scmp.eq.s32.totalorder %s33_s25, 0  ;;  %192 = sbr.rel (%p917_p5) target bundleno = 22 (0x16), region = 32 }
   0xa   : > { %s1326_s27 = scalar_select %p35_p4, %s1241_s19, %s37_s26  }
   0xf   : > { %195 = sbr.rel (!%p46_p3) target bundleno = 22 (0x16), region = 36  ;;  %s197_s28 = sand.u32 (%p46_p3), 1, %s1241_s19  }
  0x10   : > { %s971_s29 = sshll.u32 (%p46_p3), %s1249_s21, 4  ;;  %s918_s30 = sshll.u32 (%p46_p3), %s197_s28, 5 }
  0x11   : > { %s205_s8 = scalar_lea.vmem (%p46_p3), %s1460_s0, %s971_s29  ;;  %s199_s9 = scalar_lea.vmem (%p46_p3), [#allocation3], %s918_s30 }
  0x12   : > { %v218_v0 = vld [vmem:[%s205_s8] sm:$0xff] (%p46_p3)  ;;  %v220_v1 = vld [vmem:[%s205_s8 + $0x8] sm:$0xff] (%p46_p3) }
  0x13   : > { %v222_v2 = vld [vmem:[%s205_s8 + $0x20] sm:$0xff] (%p46_p3)  ;;  %219 = vst [vmem:[%s199_s9] sm:$0xff] (%p46_p3), %v218_v0  ;;  %221 = vst [vmem:[%s199_s9 + $0x8] sm:$0xff] (%p46_p3), %v220_v1  ;;  %v224_v3 = vld [vmem:[%s205_s8 + $0x28] sm:$0xff] (%p46_p3) }
  0x14   : > { %223 = vst [vmem:[%s199_s9 + $0x10] sm:$0xff] (%p46_p3), %v222_v2  ;;  %225 = vst [vmem:[%s199_s9 + $0x18] sm:$0xff] (%p46_p3), %v224_v3 }
  0x16 PF: > { %p921_p6 = scmp.ge.s32.totalorder %s1253_s22, 1  ;;  %p230_p7 = scmp.lt.s32.totalorder %s1253_s22, 3 }
  0x18   : > { %p231_p8 = pnand %p921_p6, %p230_p7 }
  0x19   : > { %s237_s10 = sand.u32 (!%p231_p8), 1, %s1237_s18   ;;  %p923_p9 = scmp.ne.s32.totalorder (!%p231_p8), %s1245_s20, 0 }
  0x1a   : > { %234 = sbr.rel (%p231_p8) target bundleno = 571 (0x23b), region = 59  ;;  %s922_s11 = sshll.u32 (!%p231_p8), %s237_s10, 5 }
  0x1b   : > { %s1337_s12 = scalar_lea.vmem (!%p231_p8), [#allocation3], %s922_s11 }
  0x21   : > { %265 = sbr.rel (%p923_p9) target bundleno = 40 (0x28), region = 67  ;;  %vm266_vm0 = vcmask (!%p923_p9), 523264   ;;  %v1255_v4 = vmov (!%p923_p9), 0.0  }
  0x22   : > { %267 = vst.msk [vmem:[#allocation2] sm:$0xff] (!%p923_p9), %vm266_vm0, %v1255_v4  ;;  %268 = vst.msk [vmem:[#allocation2 + $0x8] sm:$0xff] (!%p923_p9), %vm266_vm0, %v1255_v4 }
  0x28 PF: > { %s924_s13 = sshll.u32 %s1245_s20, 9  ;;  %v1181_v5 = vld [vmem:[%s1337_s12 + $0x4] ss:$16 sps:$4 sm:$0xff]   ;;  %v1184_v6 = vld [vmem:[%s1337_s12 + $0xc] ss:$16 sps:$4 sm:$0xff]   ;;  %vm640_vm1 = vcmask 523264  }
  0x29   : > { %s276_s14 = sshra.s32 %s924_s13, 3  ;;  %588 = vmatprep.mubr.bf16.mxu0 %v1181_v5  ;;  %629 = vmatprep.mubr.bf16.mxu1 %v1184_v6  ;;  %v1179_v37 = vld [vmem:[%s1337_s12] ss:$16 sps:$4 sm:$0xff]   ;;  %v1182_v40 = vld [vmem:[%s1337_s12 + $0x8] ss:$16 sps:$4 sm:$0xff]   ;;  %p962_p10 = scmp.ne.s32.totalorder %s1245_s20, 1 }
  0x2a   : > { %s925_s15 = sshll.u32 %s276_s14, 2  ;;  %v270_v50 = vld [vmem:[#allocation2] sm:$0xff]  ;;  %v271_v55 = vld [vmem:[#allocation2 + $0x8] sm:$0xff]  ;;  %v655_v61 = vld [vmem:[%s1463_s3 + $0x10] sm:$0xff] (!%p962_p10)  ;;  %v647_v62 = vlaneseq (!%p962_p10)  ;;  %v1256_v63 = vmov (!%p962_p10), 0.0|0.0   ;;  %vm1257_vm2 = vmmov (!%p962_p10), 0  }
  0x2b   : > { %s1346_s18 = scalar_lea.vmem %s1461_s1, %s925_s15  ;;  %v653_v59 = vld [vmem:[%s1463_s3] sm:$0xff] (!%p962_p10)  ;;  %v654_v60 = vld [vmem:[%s1463_s3 + $0x8] sm:$0xff] (!%p962_p10)  ;;  %v656_v1 = vld [vmem:[%s1463_s3 + $0x18] sm:$0xff] (!%p962_p10)  ;;  %v1258_v3 = vmov (!%p962_p10), 0.0   ;;  %vm674_vm4 = vcmask (!%p962_p10), 522240  }
  0x2c   : > { %v1147_v7 = vld [vmem:[%s1346_s18 + $0x40] sm:$0xff]   ;;  %v1151_v11 = vld [vmem:[%s1346_s18 + $0x48] sm:$0xff]   ;;  %v1155_v15 = vld [vmem:[%s1346_s18 + $0x50] sm:$0xff]   ;;  %v1073_v0 = vpack.c.bf16 (!%p962_p10), %v654_v60, %v653_v59  ;;  %v648_v2 = vand.u32 (!%p962_p10), 127, %v647_v62  ;;  %v1076_v4 = vpack.c.bf16 (!%p962_p10), %v656_v1, %v655_v61 }
  0x2d   : > { %v1148_v8 = vld [vmem:[%s1346_s18 + $0xc0] sm:$0xff]   ;;  %972 = vmatprep.subr.bf16.mxu0 %v1147_v7  ;;  %v1152_v12 = vld [vmem:[%s1346_s18 + $0xc8] sm:$0xff]   ;;  %v1156_v16 = vld [vmem:[%s1346_s18 + $0xd0] sm:$0xff]  }
  0x2e   : > { %v1149_v9 = vld [vmem:[%s1346_s18] sm:$0xff]   ;;  %994 = vmatprep.subr.bf16.mxu1 %v1148_v8  ;;  %v1153_v13 = vld [vmem:[%s1346_s18 + $0x8] sm:$0xff]   ;;  %v1157_v17 = vld [vmem:[%s1346_s18 + $0x10] sm:$0xff]   ;;  %vm649_vm3 = vcmp.ge.s32.totalorder (!%p962_p10), %v648_v2, 32 }
  0x2f   : > { %v1150_v10 = vld [vmem:[%s1346_s18 + $0x80] sm:$0xff]   ;;  %973 = vmatpush3.bf16.msra.mxu0 %v1149_v9  ;;  %v1154_v14 = vld [vmem:[%s1346_s18 + $0x88] sm:$0xff]   ;;  %v1158_v18 = vld [vmem:[%s1346_s18 + $0x90] sm:$0xff]   ;;  %v963_v9 = vsel (!%p962_p10), %vm649_vm3, 1.0, %v1258_v3 }
  0x30   : > { %995 = vmatpush3.bf16.msra.mxu1 %v1150_v10  ;;  %974 = vmatprep.subr.bf16.mxu0 %v1151_v11  ;;  %v1159_v19 = vld [vmem:[%s1346_s18 + $0x58] sm:$0xff]   ;;  %v1163_v23 = vld [vmem:[%s1346_s18 + $0x60] sm:$0xff]   ;;  %v1167_v27 = vld [vmem:[%s1346_s18 + $0x68] sm:$0xff]  }
  0x31   : > { %996 = vmatprep.subr.bf16.mxu1 %v1152_v12  ;;  %v1160_v20 = vld [vmem:[%s1346_s18 + $0xd8] sm:$0xff]   ;;  %v1164_v24 = vld [vmem:[%s1346_s18 + $0xe0] sm:$0xff]   ;;  %v1168_v28 = vld [vmem:[%s1346_s18 + $0xe8] sm:$0xff]  }
  0x32   : > { %v1161_v21 = vld [vmem:[%s1346_s18 + $0x18] sm:$0xff]   ;;  %v1165_v25 = vld [vmem:[%s1346_s18 + $0x20] sm:$0xff]   ;;  %v1169_v29 = vld [vmem:[%s1346_s18 + $0x28] sm:$0xff]  }
  0x33   : > { %975 = vmatpush3.bf16.msra.mxu0 %v1153_v13  ;;  %v1162_v22 = vld [vmem:[%s1346_s18 + $0x98] sm:$0xff]   ;;  %v1166_v26 = vld [vmem:[%s1346_s18 + $0xa0] sm:$0xff]   ;;  %v1170_v30 = vld [vmem:[%s1346_s18 + $0xa8] sm:$0xff]  }
  0x34   : > { %997 = vmatpush3.bf16.msra.mxu1 %v1154_v14  ;;  %976 = vmatprep.subr.bf16.mxu0 %v1155_v15  ;;  %v1171_v31 = vld [vmem:[%s1346_s18 + $0x70] sm:$0xff]   ;;  %v1175_v35 = vld [vmem:[%s1346_s18 + $0x78] sm:$0xff]   ;;  %v657_v6 = vld [vmem:[%s1463_s3 + $0x20] sm:$0xff] (!%p962_p10) }
  0x35   : > { %998 = vmatprep.subr.bf16.mxu1 %v1156_v16  ;;  %v1172_v32 = vld [vmem:[%s1346_s18 + $0xf0] sm:$0xff]   ;;  %v1176_v36 = vld [vmem:[%s1346_s18 + $0xf8] sm:$0xff]   ;;  %v658_v7 = vld [vmem:[%s1463_s3 + $0x28] sm:$0xff] (!%p962_p10) }
  0x36   : > { %v1173_v33 = vld [vmem:[%s1346_s18 + $0x30] sm:$0xff]   ;;  %v1177_v38 = vld [vmem:[%s1346_s18 + $0x38] sm:$0xff]   ;;  %v1079_v14 = vpack.c.bf16 (!%p962_p10), %v658_v7, %v657_v6  ;;  %v964_v15 = vld [vmem:[%s1462_s2] ss:$0 sm:$0xff] (!%p962_p10) }
  0x37   : > { %977 = vmatpush3.bf16.msra.mxu0 %v1157_v17  ;;  %v1174_v34 = vld [vmem:[%s1346_s18 + $0xb0] sm:$0xff]   ;;  %v1178_v39 = vld [vmem:[%s1346_s18 + $0xb8] sm:$0xff]  }
  0x38   : > { %999 = vmatpush3.bf16.msra.mxu1 %v1158_v18  ;;  %978 = vmatprep.subr.bf16.mxu0 %v1159_v19  ;;  %v659_v16 = vld [vmem:[%s1463_s3 + $0x30] sm:$0xff] (!%p962_p10)  ;;  %v660_v17 = vld [vmem:[%s1463_s3 + $0x38] sm:$0xff] (!%p962_p10) }
  0x39   : > { %1000 = vmatprep.subr.bf16.mxu1 %v1160_v20 }
  0x3b   : > { %979 = vmatpush3.bf16.msra.mxu0 %v1161_v21 }
  0x3c   : > { %1001 = vmatpush3.bf16.msra.mxu1 %v1162_v22  ;;  %980 = vmatprep.subr.bf16.mxu0 %v1163_v23  ;;  %v1082_v22 = vpack.c.bf16 (!%p962_p10), %v660_v17, %v659_v16 }
  0x3d   : > { %1002 = vmatprep.subr.bf16.mxu1 %v1164_v24 }
  0x3f   : > { %981 = vmatpush3.bf16.msra.mxu0 %v1165_v25 }
  0x40   : > { %1003 = vmatpush3.bf16.msra.mxu1 %v1166_v26  ;;  %982 = vmatprep.subr.bf16.mxu0 %v1167_v27 }
  0x41   : > { %1004 = vmatprep.subr.bf16.mxu1 %v1168_v28 }
  0x43   : > { %983 = vmatpush3.bf16.msra.mxu0 %v1169_v29 }
  0x44   : > { %1005 = vmatpush3.bf16.msra.mxu1 %v1170_v30  ;;  %984 = vmatprep.subr.bf16.mxu0 %v1171_v31 }
  0x45   : > { %1006 = vmatprep.subr.bf16.mxu1 %v1172_v32 }
  0x47   : > { %985 = vmatpush3.bf16.msra.mxu0 %v1173_v33 }
  0x48   : > { %1007 = vmatpush3.bf16.msra.mxu1 %v1174_v34  ;;  %986 = vmatprep.subr.bf16.mxu0 %v1175_v35 }
  0x49   : > { %1008 = vmatprep.subr.bf16.mxu1 %v1176_v36 }
  0x4b   : > { %987 = vmatpush3.bf16.msra.mxu0 %v1177_v38 }
  0x4c   : > { %1009 = vmatpush3.bf16.msra.mxu1 %v1178_v39  ;;  %1072 = vmatprep.subr.bf16.mxu0 (!%p962_p10), %v1256_v63 }
  0x4d   : > { %1084 = vmatprep.subr.bf16.mxu1 (!%p962_p10), %v1256_v63 }
  0x4e   : > { %589 = vmatmul.mubr.bf16.vlgmr.msra.gmra.mrb[0].mxu0 %v1179_v37 }
  0x4f   : > { %630 = vmatmul.mubr.bf16.vlgmr.msra.gmra.mrb[0].mxu1 %v1182_v40  ;;  %1050 = vmatprep.mubr.msk.f32.mxu0 (!%p962_p10), %vm1257_vm2, %v1258_v3 }
  0x50   : > { %1069 = vmatprep.mubr.msk.f32.mxu1 (!%p962_p10), %vm1257_vm2, %v1258_v3  ;;  %1074 = vmatpush3.bf16.msra.mxu0 (!%p962_p10), %v1073_v0 }
  0x51   : > { %1086 = vmatpush3.bf16.msra.mxu1 (!%p962_p10), %v1073_v0  ;;  %1075 = vmatprep.subr.bf16.mxu0 (!%p962_p10), %v1256_v63 }
  0x52   : > { %1087 = vmatprep.subr.bf16.mxu1 (!%p962_p10), %v1256_v63 }
  0x54   : > { %1077 = vmatpush3.bf16.msra.mxu0 (!%p962_p10), %v1076_v4 }
  0x55   : > { %1089 = vmatpush3.bf16.msra.mxu1 (!%p962_p10), %v1076_v4  ;;  %1078 = vmatprep.subr.bf16.mxu0 (!%p962_p10), %v1256_v63 }
  0x56   : > { %1090 = vmatprep.subr.bf16.mxu1 (!%p962_p10), %v1256_v63 }
  0x58   : > { %1080 = vmatpush3.bf16.msra.mxu0 (!%p962_p10), %v1079_v14 }
  0x59   : > { %1092 = vmatpush3.bf16.msra.mxu1 (!%p962_p10), %v1079_v14  ;;  %1081 = vmatprep.subr.bf16.mxu0 (!%p962_p10), %v1256_v63 }
  0x5a   : > { %1093 = vmatprep.subr.bf16.mxu1 (!%p962_p10), %v1256_v63 }
  0x5c   : > { %1083 = vmatpush3.bf16.msra.mxu0 (!%p962_p10), %v1082_v22 }
  0x5d   : > { %1095 = vmatpush3.bf16.msra.mxu1 (!%p962_p10), %v1082_v22 }
 0x121   : > { %v988_v41 = vpop.f32.mrb[0].mxu0 }
 0x122   : > { %v1010_v42 = vpop.f32.mrb[0].mxu1  ;;  %v989_v43 = vpop.f32.mrb[1].mxu0 }
 0x123   : > { %v990_v44 = vadd.f32 %v989_v43, %v988_v41  ;;  %v1011_v45 = vpop.f32.mrb[1].mxu1  ;;  %v991_v46 = vpop.f32.mrb[2].mxu0  ;;  %v661_v41 = vld [vmem:[%s1464_s4] sm:$0x1] (!%p962_p10) }
 0x124   : > { %v1012_v47 = vadd.f32 %v1011_v45, %v1010_v42  ;;  %v1013_v48 = vpop.f32.mrb[2].mxu1  ;;  %v992_v49 = vpop.f32.mrb[3].mxu0 }
 0x125   : > { %v993_v51 = vadd.f32 %v992_v49, %v991_v46  ;;  %v1014_v52 = vpop.f32.mrb[3].mxu1 }
 0x126   : > { %v632_v53 = vadd.f32 %v1012_v47, %v990_v44  ;;  %v1015_v54 = vadd.f32 %v1014_v52, %v1013_v48  ;;  %646 = sbr.rel (%p962_p10) target bundleno = 546 (0x222), region = 71 }
 0x128   : > { %v638_v56 = vadd.f32 %v632_v53, %v270_v50  ;;  %v635_v57 = vadd.f32 %v1015_v54, %v993_v51 }
 0x12a   : > { %641 = vst.msk [vmem:[#allocation2] sm:$0xff] %vm640_vm1, %v638_v56  ;;  %v639_v58 = vadd.f32 %v635_v57, %v271_v55 }
 0x12c   : > { %642 = vst.msk [vmem:[#allocation2 + $0x8] sm:$0xff] %vm640_vm1, %v639_v58 }
 0x131   : > { %v663_v5 = vld [vmem:[#allocation2] sm:$0x7f] }
 0x132   : > { %v662_v10 = vld [vmem:[#allocation2 + $0x1] sm:$0x7f]  ;;  %v664_v12 = vmul.f32 %v963_v9, %v663_v5 }
 0x133   : > { %v758_v8 = vld [vmem:[#allocation2 + $0x8] sm:$0x7f] }
 0x134   : > { %v757_v11 = vld [vmem:[#allocation2 + $0x9] sm:$0x7f]  ;;  %v759_v13 = vmul.f32 %v963_v9, %v758_v8  ;;  %v665_v18 = vsub.f32 %v662_v10, %v664_v12 }
 0x136   : > { %v760_v19 = vsub.f32 %v757_v11, %v759_v13  ;;  %v672_v20 = vadd.f32 %v964_v15, %v665_v18 }
 0x138   : > { %v761_v21 = vadd.f32 %v964_v15, %v760_v19  ;;  %v673_v23 = vmax.f32 %v672_v20, 0.0 }
 0x13a   : > { %v762_v24 = vmax.f32 %v761_v21, 0.0  ;;  %v675_v25 = vsel %vm674_vm4, %v673_v23, 0.0 }
 0x13b   : > { %v676_v27 = vrot.slane %v675_v25, 4 }
 0x13c   : > { %v763_v26 = vsel %vm674_vm4, %v762_v24, 0.0 }
 0x13d   : > { %v764_v28 = vrot.slane %v763_v26, 4  ;;  %v677_v29 = vadd.f32 %v676_v27, %v675_v25 }
 0x13f   : > { %v765_v30 = vadd.f32 %v764_v28, %v763_v26  ;;  %v678_v31 = vrot.slane %v677_v29, 2 }
 0x141   : > { %v766_v32 = vrot.slane %v765_v30, 2  ;;  %v679_v33 = vadd.f32 %v678_v31, %v677_v29 }
 0x143   : > { %v767_v34 = vadd.f32 %v766_v32, %v765_v30  ;;  %v680_v35 = vrot.slane %v679_v33, 1 }
 0x145   : > { %v768_v36 = vrot.slane %v767_v34, 1  ;;  %v681_v37 = vadd.f32 %v680_v35, %v679_v33 }
 0x147   : > { %v769_v38 = vadd.f32 %v768_v36, %v767_v34  ;;  %v682_v39 = vmul.f32 0.14285715, %v681_v37 }
 0x149   : > { %v770_v40 = vmul.f32 0.14285715, %v769_v38  ;;  %1051 = vmatmul.mubr.msk.f32.vlgmr.msra.gmra.mrb[0].mxu0 %vm640_vm1, %v682_v39 }
 0x14b   : > { %1070 = vmatmul.mubr.msk.f32.vlgmr.msra.gmra.mrb[0].mxu1 %vm640_vm1, %v770_v40 }
 0x21c   : > { %v752_v42 = vpop.f32.mrb[0].mxu0 }
 0x21d   : > { %v753_v44 = vadd.f32 %v752_v42, %v661_v41  ;;  %v1052_v46 = vpop.f32.mrb[1].mxu0 }
 0x21e   : > { %v840_v43 = vpop.f32.mrb[0].mxu1 }
 0x21f   : > { %v841_v45 = vadd.f32 %v840_v43, %v661_v41  ;;  %v1071_v47 = vpop.f32.mrb[1].mxu1  ;;  %756 = vst [vmem:[#allocation4] sm:$0x1] %v753_v44 }
 0x221   : > { %844 = vst [vmem:[#allocation4 + $0x1] sm:$0x1] %v841_v45 }
 0x222 PF: > { %p1419_p11 = scmp.eq.s32.totalorder %s915_s23, 1  ;;  %s1259_s28 = smov [#allocation4]  }
 0x223   : > { %s854_s29 = sshll.u32 %s1259_s28, 4  ;;  %s855_s29 = int_to_ptr.vmem [resolvable:$true] %s854_s29 }
 0x224   : > { %s1185_s30 = scalar_lea.vmem %s855_s29, 32  ;;  %p1192_p1 = scmp.lt.s32.totalorder %s855_s29, %s855_s29 }
 0x225   : > { %p1186_p12 = scmp.ne.s32.totalorder %s855_s29, %s1185_s30  ;;  %p1193_p2 = scmp.lt.s32.totalorder %s1185_s30, %s1185_s30 }
 0x227   : > { %p1187_p13 = pnand %p1186_p12, %p1419_p11  ;;  %p1194_p3 = por %p1193_p2, %p1192_p1 }
 0x229   : > { %p1188_p0 = pneg %p1187_p13 }
 0x22b   : > { %p1195_p4 = pnand %p1194_p3, %p1188_p0 }
 0x22d   : > { %1198 = shalt.err (!%p1195_p4)
}
 0x22e   : > { %s1199_s23 = scalar_lea.hbm %s1465_s5, 32 }
 0x22f   : > { %p1200_p5 = scmp.ne.s32.totalorder %s1465_s5, %s1199_s23  ;;  %p1205_p8 = scmp.lt.u32.totalorder %s1199_s23, %s1465_s5 }
 0x231   : > { %p1201_p6 = pnand %p1200_p5, %p1419_p11 }
 0x233   : > { %p1202_p7 = pneg %p1201_p6 }
 0x235   : > { %p1207_p9 = pnand %p1205_p8, %p1202_p7 }
 0x237   : > { %1210 = shalt.err (!%p1207_p9)
}
 0x238   : > { %1097 = dma.vmem_to_hbm [thread:$0]  (%p1419_p11), %s855_s29, 32, %s1465_s5, [#allocation5]  }
 0x239   : > { %1232 = dma.done.wait (%p1419_p11), [#allocation5], 32  }
 0x23a   : > { %1234 = vsyncadd (%p1419_p11), [#allocation5], 4294967264 }
 0x23b PF: > { %s16_s22 = sadd.s32 1, %s1253_s22   ;;  %s1467_s18 = smov %s1241_s19 }
 0x23c   : > { %p13_p10 = scmp.ge.s32.totalorder %s16_s22, 4   ;;  %s1468_s19 = smov %s1326_s27 }
 0x23d   : > { %s1469_s20 = smov %s1249_s21  ;;  %s1470_s21 = smov %s1472_s24 }
 0x23e   :  { %15 = sbr.rel (!%p13_p10) target bundleno = 3 (0x3), region = 105 }
 0x245   :  { %867 = vsyncpa [#allocation5], 1 }
 0x246   :  { %869 = vsyncpa [#allocation5 + $0x1], 1 }

</bundles_post_ra>
